<compile_context>
chip_gen: v6e
topology: v6e:2x2x1
jax: 0.10.0
libtpu: 0.0.40
codegen_flags: <defaults>
</compile_context>

<pallas_src>
import functools

import jax
import jax.numpy as jnp
from jax.experimental import pallas as pl
from jax.experimental.pallas import tpu as pltpu

_LANES = 128
_TARGET_BLOCK_BYTES = 2 * 1024 * 1024   # ~2 MiB row blocks (see header).


def _min_sublanes(dtype) -> int:
    # dtype-dependent minimum sublane tile: f32 -> 8, bf16 -> 16, int8/fp8 -> 32
    return max(8, 32 // jnp.dtype(dtype).itemsize)


def _neg_scale_kernel(neg_scale, g_ref, o_ref):
    # Backward hot path: grad_x = (-scale) * grad_y.  `neg_scale` is a Python
    # float baked in at trace time, so this is a single vmul per vreg with no
    # SMEM operand and no scalar negate.
    o_ref[...] = g_ref[...] * jnp.asarray(neg_scale, dtype=o_ref.dtype)


def _neg_scale_pallas(g, neg_scale):
    """grad_x = neg_scale * g for tensors whose element count is a multiple of 128."""
    slab = g.reshape(-1, _LANES)          # reshape only -- no pad, no extra copy
    rows = slab.shape[0]
    itemsize = jnp.dtype(slab.dtype).itemsize
    target_rows = max(_min_sublanes(slab.dtype),
                      _TARGET_BLOCK_BYTES // (_LANES * itemsize))
    # Full-extent block when the slab is small (always a legal block shape);
    # otherwise a large fixed row tile with a cdiv grid and a masked tail block.
    tm = rows if rows <= target_rows else target_rows
    grid = (pl.cdiv(rows, tm),)
    out = pl.pallas_call(
        functools.partial(_neg_scale_kernel, neg_scale),
        out_shape=jax.ShapeDtypeStruct(slab.shape, slab.dtype),
        grid_spec=pltpu.PrefetchScalarGridSpec(
            num_scalar_prefetch=0,
            grid=grid,
            in_specs=[pl.BlockSpec((tm, _LANES), lambda i: (i, 0))],
            out_specs=pl.BlockSpec((tm, _LANES), lambda i: (i, 0)),
        ),
        compiler_params=pltpu.CompilerParams(
            dimension_semantics=("parallel",)),
    )(slab)
    return out.reshape(g.shape)


def _neg_scale(g, scale):
    neg_scale = -float(scale)
    # Sizes that do not reshape to a lane-dense [rows, 128] slab use XLA's
    # fused elementwise op instead of padding + a custom-call launch.
    if g.size == 0 or (g.size % _LANES) != 0:
        return g * jnp.asarray(neg_scale, dtype=g.dtype)
    return _neg_scale_pallas(g, neg_scale)


@functools.partial(jax.custom_vjp, nondiff_argnums=(1,))
def gradient_reversal(x, scale: float):
    """Forward: identity (true no-op). Backward: -scale * grad (Pallas kernel)."""
    return x


def _gr_fwd(x, scale):
    return x, None          # forward is a pure no-op: zero HBM traffic


def _gr_bwd(scale, _res, g):
    return (_neg_scale(g, scale),)


gradient_reversal.defvjp(_gr_fwd, _gr_bwd)


class GradientReversal:
    """JAX/Pallas port of the PyTorch GradientReversal module."""

    def __init__(self, scale: float):
        self.scale = float(scale)

    def __call__(self, x):
        return gradient_reversal(x, self.scale)


if __name__ == "__main__":
    key = jax.random.PRNGKey(0)
    module = GradientReversal(scale=0.5)

    # --- small NCHW input matching the reference module's typical use -------
    # 2*4*16*16 = 2048 elems -> lane-dense [16, 128] slab, single-block grid:
    # this exercises the Pallas backward kernel at the requested small shape.
    x_small = jax.random.normal(key, (2, 4, 16, 16), dtype=jnp.float32)
    y_small = jax.block_until_ready(module(x_small))
    assert y_small.shape == x_small.shape and y_small.dtype == x_small.dtype
    assert bool(jnp.all(y_small == x_small))
    g_small = jax.block_until_ready(
        jax.grad(lambda a: jnp.sum(module(a)))(x_small))
    assert bool(jnp.allclose(g_small, -0.5 * jnp.ones_like(x_small)))

    # --- larger input that exercises a multi-row Pallas block ---------------
    x_big = jax.random.normal(key, (8, 16, 32, 32), dtype=jnp.float32)
    y_big = jax.block_until_ready(module(x_big))
    assert bool(jnp.all(y_big == x_big))
    g_big = jax.block_until_ready(
        jax.grad(lambda a: jnp.sum(module(a)))(x_big))
    assert bool(jnp.allclose(g_big, -0.5 * jnp.ones_like(x_big)))

    # --- odd size (not a multiple of 128) uses the fused-XLA fallback -------
    x_odd = jax.random.normal(key, (3, 5, 7), dtype=jnp.float32)
    g_odd = jax.block_until_ready(
        jax.grad(lambda a: jnp.sum(module(a)))(x_odd))
    assert bool(jnp.allclose(g_odd, -0.5 * jnp.ones_like(x_odd)))

    print("KERNEL_OK")
</pallas_src>

<mosaic_0001>
module attributes {stable_mosaic.version = 11 : i64} {
  func.func @_neg_scale_kernel(%arg0: i32, %arg1: memref<16x128xf32, #tpu.memory_space<vmem>>, %arg2: memref<16x128xf32, #tpu.memory_space<vmem>>) attributes {dimension_semantics = [#tpu.dimension_semantics<parallel>], iteration_bounds = array<i64: 1>, scalar_prefetch = 0 : i64, scratch_operands = 0 : i64, tpu.core_type = #tpu.core_type<tc>, window_params = [{transform_indices = @transform_0, window_bounds = array<i64: 16, 128>}, {transform_indices = @transform_1, window_bounds = array<i64: 16, 128>}]} {
    %c0 = arith.constant 0 : index
    %c0_0 = arith.constant 0 : index
    %0 = vector.load %arg1[%c0, %c0_0] : memref<16x128xf32, #tpu.memory_space<vmem>>, vector<16x128xf32>
    %cst = arith.constant -5.000000e-01 : f32
    %1 = vector.broadcast %cst : f32 to vector<16x128xf32>
    %2 = arith.mulf %0, %1 : vector<16x128xf32>
    %c0_1 = arith.constant 0 : index
    %c0_2 = arith.constant 0 : index
    %3 = vector.load %arg2[%c0_1, %c0_2] : memref<16x128xf32, #tpu.memory_space<vmem>>, vector<16x128xf32>
    tpu.vector_store %arg2[%c0_1, %c0_2], %2 {strides = array<i32>} : memref<16x128xf32, #tpu.memory_space<vmem>>, vector<16x128xf32>,
    return
  }
  func.func @transform_0(%arg0: i32) -> (i32, i32) {
    %c0_i32 = arith.constant 0 : i32
    %c0_i32_0 = arith.constant 0 : i32
    return %arg0, %c0_i32 : i32, i32
  }
  func.func @transform_1(%arg0: i32) -> (i32, i32) {
    %c0_i32 = arith.constant 0 : i32
    %c0_i32_0 = arith.constant 0 : i32
    return %arg0, %c0_i32 : i32, i32
  }
}

</mosaic_0001>

<bundles_post_ra>
// kernel: tpu_custom_call.1
= control target key start
LH: loop header
LB: loop body
LE: loop exit
PB: predicated region body
PF: predicated region fallthrough
CT: control target
= control target key end

     0   :  { %6 = vsyncpa [#allocation3], 0  ;;  %s114_s0 = inlined_call_operand.hbm [shape: f32[16,128], index: 0, kind: input, shape index: {}]   ;;  %s115_s1 = inlined_call_operand.hbm [shape: f32[16,128], index: 1, kind: output, shape index: {}]  }
   0x1   :  { %7 = vsyncpa [#allocation4], 0  ;;  %s94_s6 = smov [#allocation2]  }
   0x2   :  { %s13_s7 = sshll.u32 %s94_s6, 4  ;;  %s14_s7 = int_to_ptr.vmem [resolvable:$true] %s13_s7 }
   0x3   :  { %s58_s8 = scalar_lea.vmem %s14_s7, 256  ;;  %p63_p1 = scmp.lt.s32.totalorder %s14_s7, %s14_s7 }
   0x4   :  { %p59_p0 = scmp.ne.s32.totalorder %s14_s7, %s58_s8  ;;  %p64_p2 = scmp.lt.s32.totalorder %s58_s8, %s58_s8 }
   0x6   :  { %p65_p3 = por %p64_p2, %p63_p1 }
   0x8   :  { %p66_p4 = pnand %p65_p3, %p59_p0 }
   0xa   :  { %69 = shalt.err (!%p66_p4)
}
   0xb   :  { %s95_s9 = smov 128   ;;  %s96_s10 = smov 8  }
   0xc   :  { %19 = dma.hbm_to_vmem [thread:$0]  %s114_s0, 256, %s14_s7, [#allocation3], %s95_s9, %s95_s9, %s96_s10  }
   0xd   :  { %90 = dma.done.wait [#allocation3], 256  }
   0xe   :  { %91 = vsyncadd [#allocation3], 4294967040  ;;  %s97_s13 = smov [#allocation5]   ;;  %v23_v0 = vld [vmem:[#allocation2] sm:$0xff]  ;;  %v24_v1 = vld [vmem:[#allocation2 + $0x8] sm:$0xff] }
   0xf   :  { %s34_s14 = sshll.u32 %s97_s13, 4  ;;  %v25_v2 = vmul.f32 -0.5, %v23_v0  ;;  %v26_v3 = vmul.f32 -0.5, %v24_v1  ;;  %s35_s14 = int_to_ptr.vmem [resolvable:$true] %s34_s14 }
  0x10   :  { %s70_s15 = scalar_lea.vmem %s35_s14, 256  ;;  %p75_p6 = scmp.lt.s32.totalorder %s35_s14, %s35_s14 }
  0x11   :  { %27 = vst [vmem:[#allocation5] sm:$0xff] %v25_v2  ;;  %28 = vst [vmem:[#allocation5 + $0x8] sm:$0xff] %v26_v3  ;;  %p71_p5 = scmp.ne.s32.totalorder %s35_s14, %s70_s15  ;;  %p76_p7 = scmp.lt.s32.totalorder %s70_s15, %s70_s15 }
  0x13   :  { %p77_p8 = por %p76_p7, %p75_p6 }
  0x15   :  { %p78_p9 = pnand %p77_p8, %p71_p5 }
  0x17   :  { %81 = shalt.err (!%p78_p9)
}
  0x18   :  { %40 = dma.vmem_to_hbm [thread:$0]  %s35_s14, 256, %s115_s1, [#allocation4], %s95_s9, %s95_s9, %s96_s10  }
  0x19   :  { %92 = dma.done.wait [#allocation4], 256  }
  0x1a   :  { %93 = vsyncadd [#allocation4], 4294967040 }
  0x1b   :  { %44 = vsyncpa [#allocation3], 1 }
  0x1c   :  { %45 = vsyncpa [#allocation4], 1 }

</bundles_post_ra>
